<compile_context>
chip_gen: v7x
topology: tpu7x:2x2x1
jax: 0.10.0
libtpu: 0.0.40
codegen_flags: <defaults>
</compile_context>

<pallas_src>
import jax
import jax.numpy as jnp
from jax.experimental import pallas as pl
from jax.experimental.pallas import tpu as pltpu


# ----------------------------- Pallas kernels ------------------------------

def _mlp_kernel(x_ref, w_ref, b_ref, o_ref):
    # x: (TILE, Cin) @ w: (Cin, D) -> f32 accumulate, f32 bias add, cast to out.
    acc = jnp.dot(x_ref[...], w_ref[...], preferred_element_type=jnp.float32)
    o_ref[...] = (acc + b_ref[...]).astype(o_ref.dtype)


def _make_fuse_pred_kernel(n_stages):
    """linear_fuse (concat folded into per-stage slabs) -> ReLU -> linear_pred."""

    def kernel(*refs):
        x_refs = refs[:n_stages]
        wf_ref, wp_ref, bp_ref, o_ref = refs[n_stages:]
        # h = sum_i x_i @ W_fuse_slab_i   (== concat(outputs[::-1]) @ W_fuse)
        h = jnp.dot(x_refs[0][...], wf_ref[0], preferred_element_type=jnp.float32)
        for s in range(1, n_stages):
            h = h + jnp.dot(x_refs[s][...], wf_ref[s],
                            preferred_element_type=jnp.float32)
        h = jnp.maximum(h, 0.0)        # ReLU in f32 (BN bypassed in eval mode)
        o_ref[...] = (
            jnp.dot(h.astype(wp_ref.dtype), wp_ref[...],
                    preferred_element_type=jnp.float32)
            + bp_ref[...]
        ).astype(o_ref.dtype)

    return kernel


# ------------------------------ call wrappers --------------------------------

def _vmem_limit_bytes(pipelined_bytes, resident_bytes):
    # 2x for double buffering of pipelined blocks + resident weights + headroom,
    # clamped to stay comfortably under v7x's 64 MiB physical VMEM.
    need = 2 * pipelined_bytes + resident_bytes + (2 << 20)
    return int(min(max(need, 16 << 20), 48 << 20))


def mlp_proj(x2d, w, b, *, tile_n=256):
    """Per-stage nn.Linear: (N, Cin) @ (Cin, D) + b, tiled over N."""
    N, Cin = x2d.shape
    D = w.shape[1]
    tile = min(tile_n, N)
    grid = (pl.cdiv(N, tile),)
    bx, bw, bb, bo = (x2d.dtype.itemsize, w.dtype.itemsize,
                      b.dtype.itemsize, x2d.dtype.itemsize)
    pipelined = tile * Cin * bx + tile * D * bo
    resident = Cin * D * bw + D * bb
    return pl.pallas_call(
        _mlp_kernel,
        grid=grid,
        in_specs=[
            pl.BlockSpec((tile, Cin), lambda i: (i, 0)),
            pl.BlockSpec((Cin, D), lambda i: (0, 0)),
            pl.BlockSpec((1, D), lambda i: (0, 0)),
        ],
        out_specs=pl.BlockSpec((tile, D), lambda i: (i, 0)),
        out_shape=jax.ShapeDtypeStruct((N, D), x2d.dtype),
        compiler_params=pltpu.CompilerParams(
            dimension_semantics=("parallel",),
            vmem_limit_bytes=_vmem_limit_bytes(pipelined, resident),
        ),
        cost_estimate=pl.CostEstimate(
            flops=2 * N * Cin * D,
            bytes_accessed=N * Cin * bx + Cin * D * bw + D * bb + N * D * bo,
            transcendentals=0,
        ),
    )(x2d, w, b)


def fuse_pred(stage_feats, wf_stages, w_pred_p, b_pred_p, *, tile_n=256):
    """Fused linear_fuse + ReLU + linear_pred over N tiles (concat-free)."""
    n = len(stage_feats)
    N, D = stage_feats[0].shape
    K_pad = w_pred_p.shape[1]
    tile = min(tile_n, N)
    grid = (pl.cdiv(N, tile),)
    bx = stage_feats[0].dtype.itemsize
    pipelined = n * tile * D * bx + tile * K_pad * 4
    resident = (n * D * D * wf_stages.dtype.itemsize
                + D * K_pad * w_pred_p.dtype.itemsize
                + K_pad * b_pred_p.dtype.itemsize)
    x_spec = pl.BlockSpec((tile, D), lambda i: (i, 0))
    return pl.pallas_call(
        _make_fuse_pred_kernel(n),
        grid=grid,
        in_specs=[x_spec] * n + [
            pl.BlockSpec((n, D, D), lambda i: (0, 0, 0)),
            pl.BlockSpec((D, K_pad), lambda i: (0, 0)),
            pl.BlockSpec((1, K_pad), lambda i: (0, 0)),
        ],
        out_specs=pl.BlockSpec((tile, K_pad), lambda i: (i, 0)),
        out_shape=jax.ShapeDtypeStruct((N, K_pad), jnp.float32),
        compiler_params=pltpu.CompilerParams(
            dimension_semantics=("parallel",),
            vmem_limit_bytes=_vmem_limit_bytes(pipelined, resident),
        ),
        cost_estimate=pl.CostEstimate(
            flops=2 * N * (n * D * D + D * K_pad),
            bytes_accessed=n * N * D * bx + resident + N * K_pad * 4,
            transcendentals=0,
        ),
    )(*stage_feats, wf_stages, w_pred_p, b_pred_p)


# ------------------------------ forward glue --------------------------------

def segformer_head_forward(inputs, params, *, compute_dtype=jnp.bfloat16,
                           tile_n=256):
    """inputs: list of NCHW arrays (B, C_i, H_i, W_i). Returns (B, K, H, W) f32.

    tile_n=256 suits the toy sizes; for real SegFormer shapes use 512-2048
    (v6e/v5e) and size against 64 MiB VMEM on v7x (the helper clamps it).
    """
    B, _, H, W = inputs[0].shape
    D = params["decode_dim"]
    n = len(inputs)
    K = params["w_pred"].shape[1]
    K_pad = ((K + 127) // 128) * 128

    # Per-stage nn.Linear projection (before resize: fewer FLOPs), then resize.
    # At toy channel counts these kernels are overhead-dominated (XLA fusion
    # would do), but they use the same N-tiled layout that pays off at real
    # SegFormer channel counts.
    # TODO(synk): ResizeLayer is not defined in the reference source; assuming
    # bilinear upsampling (align_corners=False) to (H, W).
    stage_feats = []
    for x, (w, b) in zip(inputs, params["mlps"]):
        Bx, C, Hx, Wx = x.shape
        x2d = (jnp.transpose(x, (0, 2, 3, 1))
               .reshape(Bx * Hx * Wx, C).astype(compute_dtype))
        y = mlp_proj(x2d, w.astype(compute_dtype), b, tile_n=tile_n)   # (N_i, D)
        y = y.reshape(Bx, Hx, Wx, D)
        y = jax.image.resize(y, (Bx, H, W, D), method="bilinear")
        stage_feats.append(y.reshape(B * H * W, D))

    # torch.cat(outputs[::-1], dim=1) folded into per-stage weight slabs:
    # concat chunk j corresponds to stage n-1-j, so stage i is multiplied by
    # w_fuse rows [(n-1-i)*D : (n-i)*D].
    wf = params["w_fuse"]
    wf_stages = jnp.stack(
        [wf[(n - 1 - i) * D:(n - i) * D, :] for i in range(n)], axis=0
    ).astype(compute_dtype)                                            # (n, D, D)

    # Pad the prediction lane dim K -> K_pad (lane-dense output stores).
    w_pred_p = (jnp.zeros((D, K_pad), jnp.float32)
                .at[:, :K].set(params["w_pred"]).astype(compute_dtype))
    b_pred_p = jnp.zeros((1, K_pad), jnp.float32).at[:, :K].set(params["b_pred"])

    out2d = fuse_pred(stage_feats, wf_stages, w_pred_p, b_pred_p,
                      tile_n=tile_n)                                   # (N, K_pad)
    out2d = out2d[:, :K]
    return out2d.reshape(B, H, W, K).transpose(0, 3, 1, 2)             # NCHW


def reference_forward(inputs, params):
    """Pure-JAX f32 reference (module semantics, no Pallas)."""
    B, _, H, W = inputs[0].shape
    D = params["decode_dim"]
    outputs = []
    for x, (w, b) in zip(inputs, params["mlps"]):
        Bx, C, Hx, Wx = x.shape
        y = jnp.einsum("bhwc,cd->bhwd", jnp.transpose(x, (0, 2, 3, 1)), w) + b[0]
        y = jax.image.resize(y, (Bx, H, W, D), method="bilinear")
        outputs.append(y)
    x = jnp.concatenate(outputs[::-1], axis=-1)
    h = jnp.maximum(jnp.einsum("bhwc,cd->bhwd", x, params["w_fuse"]), 0.0)
    o = jnp.einsum("bhwd,dk->bhwk", h, params["w_pred"]) + params["b_pred"][0]
    return o.transpose(0, 3, 1, 2)


# ----------------------------- parameter init -------------------------------

def init_params(key, input_dims, decode_dim, num_classes):
    n = len(input_dims)
    keys = jax.random.split(key, 2 * n + 3)
    params = {"decode_dim": decode_dim, "mlps": []}
    for i, cin in enumerate(input_dims):
        # nn.Linear(in, out): stored transposed as (in, out) since we do x @ W
        w = jax.random.normal(keys[2 * i], (cin, decode_dim), jnp.float32)
        w = w / jnp.sqrt(jnp.float32(cin))
        b = 0.01 * jax.random.normal(keys[2 * i + 1], (1, decode_dim), jnp.float32)
        params["mlps"].append((w, b))
    cfuse = n * decode_dim
    params["w_fuse"] = (
        jax.random.normal(keys[2 * n], (cfuse, decode_dim), jnp.float32)
        / jnp.sqrt(jnp.float32(cfuse))
    )  # Conv2d 1x1, bias=False
    params["w_pred"] = (
        jax.random.normal(keys[2 * n + 1], (decode_dim, num_classes), jnp.float32)
        / jnp.sqrt(jnp.float32(decode_dim))
    )  # Conv2d 1x1
    params["b_pred"] = 0.01 * jax.random.normal(
        keys[2 * n + 2], (1, num_classes), jnp.float32
    )
    return params


# ---------------------------------- main -------------------------------------

if __name__ == "__main__":
    key = jax.random.PRNGKey(0)
    B = 2
    input_dims = [4, 8, 16, 32]                   # channels per pyramid stage
    spatial = [(16, 16), (8, 8), (4, 4), (2, 2)]  # H_i, W_i per stage
    decode_dim = 32
    num_classes = 19

    k_inp, k_par = jax.random.split(key)
    inp_keys = jax.random.split(k_inp, len(input_dims))
    inputs = [
        jax.random.normal(k, (B, c, h, w), jnp.float32)
        for k, c, (h, w) in zip(inp_keys, input_dims, spatial)
    ]
    params = init_params(k_par, input_dims, decode_dim, num_classes)

    ref = jax.block_until_ready(reference_forward(inputs, params))

    # f32 compute path: exact check against module semantics.
    out_f32 = jax.block_until_ready(
        segformer_head_forward(inputs, params, compute_dtype=jnp.float32))
    assert out_f32.shape == (B, num_classes, 16, 16), out_f32.shape
    assert jnp.allclose(out_f32, ref, atol=1e-4, rtol=1e-4), "f32 mismatch"

    # bf16-operand / f32-accumulate path (fast MXU path on v6e/v7x): looser
    # tolerance, dominated by bf16 operand rounding.
    out_bf16 = jax.block_until_ready(
        segformer_head_forward(inputs, params, compute_dtype=jnp.bfloat16))
    assert out_bf16.shape == (B, num_classes, 16, 16), out_bf16.shape
    max_err = float(jnp.max(jnp.abs(out_bf16 - ref)))
    assert max_err < 0.25, f"bf16 path mismatch (max abs err {max_err})"

    print("KERNEL_OK")
</pallas_src>

<mosaic_0001>
module attributes {stable_mosaic.version = 11 : i64} {
  func.func @_mlp_kernel(%arg0: i32, %arg1: memref<256x4xf32, #tpu.memory_space<vmem>>, %arg2: memref<4x32xf32, #tpu.memory_space<vmem>>, %arg3: memref<1x32xf32, #tpu.memory_space<vmem>>, %arg4: memref<256x32xf32, #tpu.memory_space<vmem>>) attributes {dimension_semantics = [#tpu.dimension_semantics<parallel>], iteration_bounds = array<i64: 2>, scalar_prefetch = 0 : i64, scratch_operands = 0 : i64, tpu.core_type = #tpu.core_type<tc>, window_params = [{transform_indices = @transform_0, window_bounds = array<i64: 256, 4>}, {pipeline_mode = #tpu.pipeline_mode<synchronous>, transform_indices = @transform_1, window_bounds = array<i64: 4, 32>}, {pipeline_mode = #tpu.pipeline_mode<synchronous>, transform_indices = @transform_2, window_bounds = array<i64: 1, 32>}, {transform_indices = @transform_3, window_bounds = array<i64: 256, 32>}]} {
    %c0 = arith.constant 0 : index
    %c0_0 = arith.constant 0 : index
    %0 = vector.load %arg1[%c0, %c0_0] : memref<256x4xf32, #tpu.memory_space<vmem>>, vector<256x4xf32>
    %c0_1 = arith.constant 0 : index
    %c0_2 = arith.constant 0 : index
    %1 = vector.load %arg2[%c0_1, %c0_2] : memref<4x32xf32, #tpu.memory_space<vmem>>, vector<4x32xf32>
    %cst = arith.constant dense<0.000000e+00> : vector<256x32xf32>
    %2 = tpu.matmul %0, %1, %cst {dimension_numbers = #tpu.dot_dimension_numbers<[1], [0], [0], [1], [0, 0, 1, 1], [], []>} : vector<256x4xf32>, vector<4x32xf32>, vector<256x32xf32> -> vector<256x32xf32>
    %c0_3 = arith.constant 0 : index
    %c0_4 = arith.constant 0 : index
    %3 = vector.load %arg3[%c0_3, %c0_4] : memref<1x32xf32, #tpu.memory_space<vmem>>, vector<1x32xf32>
    %4 = vector.broadcast %3 : vector<1x32xf32> to vector<256x32xf32>
    %5 = arith.addf %2, %4 : vector<256x32xf32>
    %c0_5 = arith.constant 0 : index
    %c0_6 = arith.constant 0 : index
    %6 = vector.load %arg4[%c0_5, %c0_6] : memref<256x32xf32, #tpu.memory_space<vmem>>, vector<256x32xf32>
    tpu.vector_store %arg4[%c0_5, %c0_6], %5 {strides = array<i32>} : memref<256x32xf32, #tpu.memory_space<vmem>>, vector<256x32xf32>,
    return
  }
  func.func @transform_0(%arg0: i32) -> (i32, i32) {
    %c0_i32 = arith.constant 0 : i32
    %c0_i32_0 = arith.constant 0 : i32
    return %arg0, %c0_i32 : i32, i32
  }
  func.func @transform_1(%arg0: i32) -> (i32, i32) {
    %c0_i32 = arith.constant 0 : i32
    %c0_i32_0 = arith.constant 0 : i32
    %c0_i32_1 = arith.constant 0 : i32
    return %c0_i32, %c0_i32_0 : i32, i32
  }
  func.func @transform_2(%arg0: i32) -> (i32, i32) {
    %c0_i32 = arith.constant 0 : i32
    %c0_i32_0 = arith.constant 0 : i32
    %c0_i32_1 = arith.constant 0 : i32
    return %c0_i32, %c0_i32_0 : i32, i32
  }
  func.func @transform_3(%arg0: i32) -> (i32, i32) {
    %c0_i32 = arith.constant 0 : i32
    %c0_i32_0 = arith.constant 0 : i32
    return %arg0, %c0_i32 : i32, i32
  }
}

</mosaic_0001>

<bundles_post_ra>
// kernel: tpu_custom_call.1
= control target key start
LH: loop header
LB: loop body
LE: loop exit
PB: predicated region body
PF: predicated region fallthrough
CT: control target
= control target key end

     0   :  { %s795_s12 = smov 0   ;;  %s991_s0 = inlined_call_operand.vmem [shape: f32[512,4], index: 0, kind: input, shape index: {}]   ;;  %s992_s1 = inlined_call_operand.vmem [shape: f32[4,32], index: 1, kind: input, shape index: {}]   ;;  %s993_s2 = inlined_call_operand.vmem [shape: f32[1,32], index: 2, kind: input, shape index: {}]   ;;  %s994_s3 = inlined_call_operand.vmem [shape: f32[512,32], index: 3, kind: output, shape index: {}]  }
   0x1 LB: > { %s629_s13 = sadd.s32 4294967295, %s773_s12   ;;  %p633_p0 = scmp.ge.s32.totalorder %s773_s12, 1  ;;  %s773_s12 = sphi %s795_s12, %s13_s12  }
   0x2   : > { %p138_p1 = scmp.lt.s32.totalorder %s773_s12, 3 }
   0x4   : > { %p139_p2 = pnand %p633_p0, %p138_p1 }
   0x5   : > { %v206_v0 = vld [vmem:[%s992_s1] sm:$0xf] (!%p139_p2)  ;;  %vm311_vm0 = vcmask (!%p139_p2), 1043456   ;;  %s634_s16 = sshll.u32 (!%p139_p2), %s629_s13, 5  ;;  %vm214_vm1 = vcmask (!%p139_p2), 31744   ;;  %vm540_vm2 = vcmask (!%p139_p2), 261120  }
   0x6   : > { %142 = sbr.rel (%p139_p2) target bundleno = 263 (0x107), region = 32  ;;  %707 = vmatprep.subr.msk.mxu0 (!%p139_p2), %vm311_vm0, %v206_v0  ;;  %757 = vmatprep.subr.msk.mxu1 (!%p139_p2), %vm311_vm0, %v206_v0  ;;  %p163_p3 = scmp.lt.s32.totalorder (!%p139_p2), %s634_s16, 63  ;;  %v883_v33 = vld [vmem:[%s993_s2] ss:$0 sm:$0xff] (!%p139_p2) }
   0x7   : > { %708 = vmatpush3.msk.msra.mxu0 (!%p139_p2), %vm311_vm0, %v206_v0  ;;  %758 = vmatpush3.msk.msra.mxu1 (!%p139_p2), %vm311_vm0, %v206_v0 }
   0xd   : > { %s996_s16 = smov (!%p163_p3, %s634_s16), 63 }
   0xe   : > { %s635_s17 = sshll.u32 %s996_s16, 3 }
   0xf   : > { %s814_s20 = scalar_lea.vmem %s991_s0, %s635_s17  ;;  %s890_s25 = scalar_lea.vmem %s994_s3, %s635_s17 }
  0x10   : > { %v174_v1 = vld [vmem:[%s814_s20] sm:$0xff]  ;;  %v175_v3 = vld [vmem:[%s814_s20 + $0x8] sm:$0xff]  ;;  %v176_v5 = vld [vmem:[%s814_s20 + $0x10] sm:$0xff] }
  0x11   : > { %v190_v2 = vld [vmem:[%s814_s20 + $0x80] sm:$0xff]  ;;  %709 = vmatprep.mubr.msk.f32.mxu0 %vm214_vm1, %v174_v1  ;;  %v191_v4 = vld [vmem:[%s814_s20 + $0x88] sm:$0xff]  ;;  %v192_v6 = vld [vmem:[%s814_s20 + $0x90] sm:$0xff] }
  0x12   : > { %733 = vmatprep.mubr.msk.f32.mxu1 %vm214_vm1, %v190_v2  ;;  %710 = vmatmul.mubr.msk.f32.vlgmr.msra.gmra.mrb[0].mxu0 %vm214_vm1, %v175_v3  ;;  %v177_v7 = vld [vmem:[%s814_s20 + $0x18] sm:$0xff]  ;;  %v178_v9 = vld [vmem:[%s814_s20 + $0x20] sm:$0xff]  ;;  %v179_v11 = vld [vmem:[%s814_s20 + $0x28] sm:$0xff] }
  0x13   : > { %734 = vmatmul.mubr.msk.f32.vlgmr.msra.gmra.mrb[0].mxu1 %vm214_vm1, %v191_v4  ;;  %712 = vmatprep.mubr.msk.f32.mxu0 %vm214_vm1, %v176_v5  ;;  %v193_v8 = vld [vmem:[%s814_s20 + $0x98] sm:$0xff]  ;;  %v194_v10 = vld [vmem:[%s814_s20 + $0xa0] sm:$0xff]  ;;  %v195_v12 = vld [vmem:[%s814_s20 + $0xa8] sm:$0xff] }
  0x14   : > { %736 = vmatprep.mubr.msk.f32.mxu1 %vm214_vm1, %v192_v6  ;;  %v180_v13 = vld [vmem:[%s814_s20 + $0x30] sm:$0xff]  ;;  %v181_v15 = vld [vmem:[%s814_s20 + $0x38] sm:$0xff]  ;;  %v182_v17 = vld [vmem:[%s814_s20 + $0x40] sm:$0xff] }
  0x15   : > { %v196_v14 = vld [vmem:[%s814_s20 + $0xb0] sm:$0xff]  ;;  %v197_v16 = vld [vmem:[%s814_s20 + $0xb8] sm:$0xff]  ;;  %v198_v18 = vld [vmem:[%s814_s20 + $0xc0] sm:$0xff] }
  0x16   : > { %713 = vmatmul.mubr.msk.f32.gmra.mrb[2].mxu0 %vm214_vm1, %v177_v7  ;;  %v183_v19 = vld [vmem:[%s814_s20 + $0x48] sm:$0xff]  ;;  %v184_v21 = vld [vmem:[%s814_s20 + $0x50] sm:$0xff]  ;;  %v185_v23 = vld [vmem:[%s814_s20 + $0x58] sm:$0xff] }
  0x17   : > { %737 = vmatmul.mubr.msk.f32.gmra.mrb[2].mxu1 %vm214_vm1, %v193_v8  ;;  %715 = vmatprep.mubr.msk.f32.mxu0 %vm214_vm1, %v178_v9  ;;  %v199_v20 = vld [vmem:[%s814_s20 + $0xc8] sm:$0xff]  ;;  %v200_v22 = vld [vmem:[%s814_s20 + $0xd0] sm:$0xff]  ;;  %v201_v24 = vld [vmem:[%s814_s20 + $0xd8] sm:$0xff] }
  0x18   : > { %739 = vmatprep.mubr.msk.f32.mxu1 %vm214_vm1, %v194_v10  ;;  %v186_v25 = vld [vmem:[%s814_s20 + $0x60] sm:$0xff]  ;;  %v187_v27 = vld [vmem:[%s814_s20 + $0x68] sm:$0xff]  ;;  %v188_v29 = vld [vmem:[%s814_s20 + $0x70] sm:$0xff] }
  0x19   : > { %v202_v26 = vld [vmem:[%s814_s20 + $0xe0] sm:$0xff]  ;;  %v203_v28 = vld [vmem:[%s814_s20 + $0xe8] sm:$0xff]  ;;  %v204_v30 = vld [vmem:[%s814_s20 + $0xf0] sm:$0xff] }
  0x1a   : > { %716 = vmatmul.mubr.msk.f32.gmra.mrb[4].mxu0 %vm214_vm1, %v179_v11  ;;  %v189_v31 = vld [vmem:[%s814_s20 + $0x78] sm:$0xff] }
  0x1b   : > { %740 = vmatmul.mubr.msk.f32.gmra.mrb[4].mxu1 %vm214_vm1, %v195_v12  ;;  %718 = vmatprep.mubr.msk.f32.mxu0 %vm214_vm1, %v180_v13  ;;  %v205_v32 = vld [vmem:[%s814_s20 + $0xf8] sm:$0xff] }
  0x1c   : > { %742 = vmatprep.mubr.msk.f32.mxu1 %vm214_vm1, %v196_v14 }
  0x1e   : > { %719 = vmatmul.mubr.msk.f32.gmra.mrb[6].mxu0 %vm214_vm1, %v181_v15 }
  0x1f   : > { %743 = vmatmul.mubr.msk.f32.gmra.mrb[6].mxu1 %vm214_vm1, %v197_v16  ;;  %721 = vmatprep.mubr.msk.f32.mxu0 %vm214_vm1, %v182_v17 }
  0x20   : > { %745 = vmatprep.mubr.msk.f32.mxu1 %vm214_vm1, %v198_v18 }
  0x22   : > { %722 = vmatmul.mubr.msk.f32.gmra.mrb[8].mxu0 %vm214_vm1, %v183_v19 }
  0x23   : > { %746 = vmatmul.mubr.msk.f32.gmra.mrb[8].mxu1 %vm214_vm1, %v199_v20  ;;  %724 = vmatprep.mubr.msk.f32.mxu0 %vm214_vm1, %v184_v21 }
  0x24   : > { %748 = vmatprep.mubr.msk.f32.mxu1 %vm214_vm1, %v200_v22 }
  0x26   : > { %725 = vmatmul.mubr.msk.f32.gmra.mrb[10].mxu0 %vm214_vm1, %v185_v23 }
  0x27   : > { %749 = vmatmul.mubr.msk.f32.gmra.mrb[10].mxu1 %vm214_vm1, %v201_v24  ;;  %727 = vmatprep.mubr.msk.f32.mxu0 %vm214_vm1, %v186_v25 }
  0x28   : > { %751 = vmatprep.mubr.msk.f32.mxu1 %vm214_vm1, %v202_v26 }
  0x2a   : > { %728 = vmatmul.mubr.msk.f32.gmra.mrb[12].mxu0 %vm214_vm1, %v187_v27 }
  0x2b   : > { %752 = vmatmul.mubr.msk.f32.gmra.mrb[12].mxu1 %vm214_vm1, %v203_v28  ;;  %730 = vmatprep.mubr.msk.f32.mxu0 %vm214_vm1, %v188_v29 }
  0x2c   : > { %754 = vmatprep.mubr.msk.f32.mxu1 %vm214_vm1, %v204_v30 }
  0x2e   : > { %731 = vmatmul.mubr.msk.f32.gmra.mrb[14].mxu0 %vm214_vm1, %v189_v31 }
  0x2f   : > { %755 = vmatmul.mubr.msk.f32.gmra.mrb[14].mxu1 %vm214_vm1, %v205_v32 }
  0xe5   : > { %v711_v34 = vpop.f32.mrb[0].mxu0 }
  0xe6   : > { %v735_v35 = vpop.f32.mrb[0].mxu1  ;;  %v387_v36 = vadd.f32 %v711_v34, %v883_v33  ;;  %v381_v38 = vpop.f32.mrb[1].mxu0 }
  0xe7   : > { %v467_v37 = vadd.f32 %v735_v35, %v883_v33  ;;  %v461_v39 = vpop.f32.mrb[1].mxu1  ;;  %v382_v40 = vadd.f32 %v883_v33, %v381_v38 }
  0xe8   : > { %v462_v41 = vadd.f32 %v883_v33, %v461_v39  ;;  %542 = vst.msk [vmem:[%s890_s25 + $0x8] sm:$0xff] %vm540_vm2, %v387_v36 }
  0xe9   : > { %558 = vst.msk [vmem:[%s890_s25 + $0x88] sm:$0xff] %vm540_vm2, %v467_v37  ;;  %541 = vst.msk [vmem:[%s890_s25] sm:$0xff] %vm540_vm2, %v382_v40  ;;  %v714_v42 = vpop.f32.mrb[2].mxu0 }
  0xea   : > { %557 = vst.msk [vmem:[%s890_s25 + $0x80] sm:$0xff] %vm540_vm2, %v462_v41  ;;  %v738_v43 = vpop.f32.mrb[2].mxu1  ;;  %v397_v44 = vadd.f32 %v714_v42, %v883_v33  ;;  %v391_v46 = vpop.f32.mrb[3].mxu0 }
  0xeb   : > { %v477_v45 = vadd.f32 %v738_v43, %v883_v33  ;;  %v471_v47 = vpop.f32.mrb[3].mxu1  ;;  %v392_v48 = vadd.f32 %v883_v33, %v391_v46 }
  0xec   : > { %v472_v49 = vadd.f32 %v883_v33, %v471_v47  ;;  %544 = vst.msk [vmem:[%s890_s25 + $0x18] sm:$0xff] %vm540_vm2, %v397_v44 }
  0xed   : > { %560 = vst.msk [vmem:[%s890_s25 + $0x98] sm:$0xff] %vm540_vm2, %v477_v45  ;;  %543 = vst.msk [vmem:[%s890_s25 + $0x10] sm:$0xff] %vm540_vm2, %v392_v48  ;;  %v717_v50 = vpop.f32.mrb[4].mxu0 }
  0xee   : > { %559 = vst.msk [vmem:[%s890_s25 + $0x90] sm:$0xff] %vm540_vm2, %v472_v49  ;;  %v741_v51 = vpop.f32.mrb[4].mxu1  ;;  %v407_v52 = vadd.f32 %v717_v50, %v883_v33  ;;  %v401_v54 = vpop.f32.mrb[5].mxu0 }
  0xef   : > { %v487_v53 = vadd.f32 %v741_v51, %v883_v33  ;;  %v481_v55 = vpop.f32.mrb[5].mxu1  ;;  %v402_v56 = vadd.f32 %v883_v33, %v401_v54 }
  0xf0   : > { %v482_v57 = vadd.f32 %v883_v33, %v481_v55  ;;  %546 = vst.msk [vmem:[%s890_s25 + $0x28] sm:$0xff] %vm540_vm2, %v407_v52 }
  0xf1   : > { %562 = vst.msk [vmem:[%s890_s25 + $0xa8] sm:$0xff] %vm540_vm2, %v487_v53  ;;  %545 = vst.msk [vmem:[%s890_s25 + $0x20] sm:$0xff] %vm540_vm2, %v402_v56  ;;  %v720_v58 = vpop.f32.mrb[6].mxu0 }
  0xf2   : > { %561 = vst.msk [vmem:[%s890_s25 + $0xa0] sm:$0xff] %vm540_vm2, %v482_v57  ;;  %v744_v59 = vpop.f32.mrb[6].mxu1  ;;  %v417_v60 = vadd.f32 %v720_v58, %v883_v33  ;;  %v411_v62 = vpop.f32.mrb[7].mxu0 }
  0xf3   : > { %v497_v61 = vadd.f32 %v744_v59, %v883_v33  ;;  %v491_v63 = vpop.f32.mrb[7].mxu1  ;;  %v412_v0 = vadd.f32 %v883_v33, %v411_v62 }
  0xf4   : > { %v492_v1 = vadd.f32 %v883_v33, %v491_v63  ;;  %548 = vst.msk [vmem:[%s890_s25 + $0x38] sm:$0xff] %vm540_vm2, %v417_v60 }
  0xf5   : > { %564 = vst.msk [vmem:[%s890_s25 + $0xb8] sm:$0xff] %vm540_vm2, %v497_v61  ;;  %547 = vst.msk [vmem:[%s890_s25 + $0x30] sm:$0xff] %vm540_vm2, %v412_v0  ;;  %v723_v2 = vpop.f32.mrb[8].mxu0 }
  0xf6   : > { %563 = vst.msk [vmem:[%s890_s25 + $0xb0] sm:$0xff] %vm540_vm2, %v492_v1  ;;  %v747_v3 = vpop.f32.mrb[8].mxu1  ;;  %v427_v4 = vadd.f32 %v723_v2, %v883_v33  ;;  %v421_v6 = vpop.f32.mrb[9].mxu0 }
  0xf7   : > { %v507_v5 = vadd.f32 %v747_v3, %v883_v33  ;;  %v501_v7 = vpop.f32.mrb[9].mxu1  ;;  %v422_v8 = vadd.f32 %v883_v33, %v421_v6 }
  0xf8   : > { %v502_v9 = vadd.f32 %v883_v33, %v501_v7  ;;  %550 = vst.msk [vmem:[%s890_s25 + $0x48] sm:$0xff] %vm540_vm2, %v427_v4 }
  0xf9   : > { %566 = vst.msk [vmem:[%s890_s25 + $0xc8] sm:$0xff] %vm540_vm2, %v507_v5  ;;  %549 = vst.msk [vmem:[%s890_s25 + $0x40] sm:$0xff] %vm540_vm2, %v422_v8  ;;  %v726_v10 = vpop.f32.mrb[10].mxu0 }
  0xfa   : > { %565 = vst.msk [vmem:[%s890_s25 + $0xc0] sm:$0xff] %vm540_vm2, %v502_v9  ;;  %v750_v11 = vpop.f32.mrb[10].mxu1  ;;  %v437_v12 = vadd.f32 %v726_v10, %v883_v33  ;;  %v431_v14 = vpop.f32.mrb[11].mxu0 }
  0xfb   : > { %v517_v13 = vadd.f32 %v750_v11, %v883_v33  ;;  %v511_v15 = vpop.f32.mrb[11].mxu1  ;;  %v432_v16 = vadd.f32 %v883_v33, %v431_v14 }
  0xfc   : > { %v512_v17 = vadd.f32 %v883_v33, %v511_v15  ;;  %552 = vst.msk [vmem:[%s890_s25 + $0x58] sm:$0xff] %vm540_vm2, %v437_v12 }
  0xfd   : > { %568 = vst.msk [vmem:[%s890_s25 + $0xd8] sm:$0xff] %vm540_vm2, %v517_v13  ;;  %551 = vst.msk [vmem:[%s890_s25 + $0x50] sm:$0xff] %vm540_vm2, %v432_v16  ;;  %v729_v18 = vpop.f32.mrb[12].mxu0 }
  0xfe   : > { %567 = vst.msk [vmem:[%s890_s25 + $0xd0] sm:$0xff] %vm540_vm2, %v512_v17  ;;  %v753_v19 = vpop.f32.mrb[12].mxu1  ;;  %v447_v20 = vadd.f32 %v729_v18, %v883_v33  ;;  %v441_v22 = vpop.f32.mrb[13].mxu0 }
  0xff   : > { %v527_v21 = vadd.f32 %v753_v19, %v883_v33  ;;  %v521_v23 = vpop.f32.mrb[13].mxu1  ;;  %v442_v24 = vadd.f32 %v883_v33, %v441_v22 }
 0x100   : > { %v522_v25 = vadd.f32 %v883_v33, %v521_v23  ;;  %554 = vst.msk [vmem:[%s890_s25 + $0x68] sm:$0xff] %vm540_vm2, %v447_v20 }
 0x101   : > { %570 = vst.msk [vmem:[%s890_s25 + $0xe8] sm:$0xff] %vm540_vm2, %v527_v21  ;;  %553 = vst.msk [vmem:[%s890_s25 + $0x60] sm:$0xff] %vm540_vm2, %v442_v24  ;;  %v732_v26 = vpop.f32.mrb[14].mxu0 }
 0x102   : > { %569 = vst.msk [vmem:[%s890_s25 + $0xe0] sm:$0xff] %vm540_vm2, %v522_v25  ;;  %v756_v27 = vpop.f32.mrb[14].mxu1  ;;  %v457_v28 = vadd.f32 %v732_v26, %v883_v33  ;;  %v451_v30 = vpop.f32.mrb[15].mxu0 }
 0x103   : > { %v537_v29 = vadd.f32 %v756_v27, %v883_v33  ;;  %v531_v31 = vpop.f32.mrb[15].mxu1  ;;  %v452_v32 = vadd.f32 %v883_v33, %v451_v30 }
 0x104   : > { %v532_v34 = vadd.f32 %v883_v33, %v531_v31  ;;  %556 = vst.msk [vmem:[%s890_s25 + $0x78] sm:$0xff] %vm540_vm2, %v457_v28 }
 0x105   : > { %572 = vst.msk [vmem:[%s890_s25 + $0xf8] sm:$0xff] %vm540_vm2, %v537_v29  ;;  %555 = vst.msk [vmem:[%s890_s25 + $0x70] sm:$0xff] %vm540_vm2, %v452_v32 }
 0x106   : > { %571 = vst.msk [vmem:[%s890_s25 + $0xf0] sm:$0xff] %vm540_vm2, %v532_v34 }
 0x107 PF: > { %s13_s12 = sadd.s32 1, %s773_s12  }
 0x108   : > { %p10_p4 = scmp.ge.s32.totalorder %s13_s12, 4  }
 0x10a   :  { %12 = sbr.rel (!%p10_p4) target bundleno = 1 (0x1), region = 62 }

</bundles_post_ra>
